<compile_context>
chip_gen: v5e
topology: v5e:2x2
jax: 0.10.0
libtpu: 0.0.40
codegen_flags: <defaults>
</compile_context>

<pallas_src>
import functools

import jax
import jax.numpy as jnp
from jax import lax
from jax.experimental import pallas as pl
from jax.experimental.pallas import tpu as pltpu


def _round_up(v, m):
    return ((v + m - 1) // m) * m


def _vmem_capacity_bytes():
    """Generation-aware VMEM capacity (v5e/v6e: 128 MiB, v7x: 64 MiB/TC)."""
    try:
        info = pltpu.get_tpu_info()
        cap = getattr(info, "vmem_capacity_bytes", None)
        if cap:
            return int(cap)
    except Exception:
        pass
    return 64 * 1024 * 1024  # conservative fallback (assume v7x)


def _conv_gemm_kernel(w_ref, p_ref, b_ref, o_ref):
    # (K, CK) @ (CK, tile_m) -> (K, tile_m); M on the lane axis -> lane-dense
    # unmasked stores.  f32 accumulate, f32 bias added before the cast.
    prec = (lax.Precision.HIGHEST
            if w_ref.dtype == jnp.float32 else lax.Precision.DEFAULT)
    acc = jnp.dot(w_ref[...], p_ref[...],
                  preferred_element_type=jnp.float32, precision=prec)
    o_ref[...] = (acc + b_ref[...]).astype(o_ref.dtype)


@functools.partial(jax.jit, static_argnames=("tile_m_target", "compute_dtype"))
def conv2d_pallas(x, weight, bias, *, tile_m_target=8192, compute_dtype=None):
    """Equivalent of conv2d_triton: stride = kernel size, no padding."""
    B, C, H, W = x.shape
    K, Cw, kh, kw = weight.shape
    assert C == Cw, "channel mismatch"
    assert H % kh == 0 and W % kw == 0, "H/W must be divisible by kernel dims"
    OH, OW = H // kh, W // kw

    M = B * OH * OW
    CK = C * kh * kw

    cdtype = jnp.dtype(compute_dtype) if compute_dtype is not None else jnp.dtype(x.dtype)
    c_item = cdtype.itemsize
    o_item = jnp.dtype(x.dtype).itemsize

    # ---- tiling / VMEM budget (generation aware) ----------------------------
    vmem_cap = _vmem_capacity_bytes()
    budget = max(min(int(0.75 * vmem_cap), vmem_cap - 16 * 2**20), 16 * 2**20)

    def vmem_est(tm):
        patch = 2 * CK * tm * c_item          # double-buffered patch tile
        out_t = 2 * K * tm * o_item           # double-buffered output tile
        wght = 2 * K * CK * c_item            # resident weight (counted 2x)
        bi = 2 * K * 4                        # f32 bias
        return patch + out_t + wght + bi

    M128 = _round_up(M, 128)
    tile_m = min(_round_up(tile_m_target, 128), M128)
    while tile_m > 128 and vmem_est(tile_m) > budget:
        tile_m = max(128, _round_up(tile_m // 2, 128))
    # Keep >= 2 grid steps when possible so v7x's second TensorCore gets work.
    if M128 >= 256:
        tile_m = min(tile_m, _round_up(pl.cdiv(M128, 2), 128))
    n_tiles = pl.cdiv(M128, tile_m)
    # Rebalance: padding waste bounded by ~128 * n_tiles rather than tile_m.
    tile_m = _round_up(pl.cdiv(M128, n_tiles), 128)
    M_pad = n_tiles * tile_m
    assert tile_m % 128 == 0

    # ---- glue (plain JAX): im2col with M on the lane axis -------------------
    # (B,C,H,W) -> (B,C,OH,kh,OW,kw) -> (C,kh,kw,B,OH,OW) -> (CK, M).
    # Row ordering (c, r, s) matches weight.reshape(K, CK); column ordering
    # (b, oh, ow) matches the final reshape back to NCHW.
    # TODO(synk): fuse this gather into the kernel (see header note).
    patches_t = (
        x.reshape(B, C, OH, kh, OW, kw)
        .transpose(1, 3, 5, 0, 2, 4)
        .reshape(CK, M)
        .astype(cdtype)
    )
    if M_pad != M:
        patches_t = jnp.pad(patches_t, ((0, 0), (0, M_pad - M)))

    wmat = weight.reshape(K, CK).astype(cdtype)   # (K, CK), resident
    bvec = bias.reshape(K, 1).astype(jnp.float32)  # f32 bias -> f32 acc

    cost = pl.CostEstimate(
        flops=2 * M_pad * CK * K,
        transcendentals=0,
        bytes_accessed=(CK * M_pad + K * CK) * c_item + K * M_pad * o_item + K * 4,
    )

    out_flat = pl.pallas_call(
        _conv_gemm_kernel,
        out_shape=jax.ShapeDtypeStruct((K, M_pad), x.dtype),
        grid_spec=pl.GridSpec(
            grid=(n_tiles,),
            in_specs=[
                pl.BlockSpec((K, CK), lambda i: (0, 0)),           # weight (resident)
                pl.BlockSpec((CK, tile_m), lambda i: (0, i)),      # patch tile
                pl.BlockSpec((K, 1), lambda i: (0, 0)),            # bias (resident)
            ],
            out_specs=pl.BlockSpec((K, tile_m), lambda i: (0, i)),
        ),
        compiler_params=pltpu.CompilerParams(
            dimension_semantics=("parallel",),
            vmem_limit_bytes=int(min(max(2 * vmem_est(tile_m), 32 * 2**20), budget)),
        ),
        cost_estimate=cost,
    )(wmat, patches_t, bvec)

    # ---- glue: back to NCHW (small: K*M elements) ---------------------------
    out = out_flat[:, :M].reshape(K, B, OH, OW).transpose(1, 0, 2, 3)
    return out.astype(x.dtype)


class Conv2DPallas:
    """Mirror of the PyTorch Conv2DTriton module (forward only)."""

    def __init__(self, in_channels, out_channels, kernel_size, key):
        assert isinstance(kernel_size, tuple) and len(kernel_size) == 2
        kh, kw = kernel_size
        kw_key, kb_key = jax.random.split(key)
        # The torch module inits to zeros (trivial test); use small random
        # values instead so the numerical check is meaningful.
        self.weight = 0.1 * jax.random.normal(
            kw_key, (out_channels, in_channels, kh, kw), dtype=jnp.float32
        )
        self.bias = 0.1 * jax.random.normal(
            kb_key, (out_channels,), dtype=jnp.float32
        )

    def __call__(self, x):
        return conv2d_pallas(x, self.weight, self.bias)


def _reference_conv(x, weight, bias):
    kh, kw = weight.shape[2], weight.shape[3]
    out = lax.conv_general_dilated(
        x, weight,
        window_strides=(kh, kw),
        padding="VALID",
        dimension_numbers=("NCHW", "OIHW", "NCHW"),
    )
    return out + bias[None, :, None, None]


if __name__ == "__main__":
    key = jax.random.PRNGKey(0)
    k_x, k_mod = jax.random.split(key)

    B, C, H, W = 2, 4, 16, 16
    out_channels = 8
    kernel_size = (4, 4)

    x = jax.random.normal(k_x, (B, C, H, W), dtype=jnp.float32)
    mod = Conv2DPallas(C, out_channels, kernel_size, k_mod)

    y = mod(x)
    jax.block_until_ready(y)

    y_ref = _reference_conv(x, mod.weight, mod.bias)
    assert y.shape == (B, out_channels, H // kernel_size[0], W // kernel_size[1])
    assert jnp.allclose(y, y_ref, atol=1e-4, rtol=1e-4)

    print("KERNEL_OK")
</pallas_src>

<mosaic_0001>
module attributes {stable_mosaic.version = 11 : i64} {
  func.func @_conv_gemm_kernel(%arg0: i32, %arg1: memref<8x64xf32, #tpu.memory_space<vmem>>, %arg2: memref<64x128xf32, #tpu.memory_space<vmem>>, %arg3: memref<8x1xf32, #tpu.memory_space<vmem>>, %arg4: memref<8x128xf32, #tpu.memory_space<vmem>>) attributes {dimension_semantics = [#tpu.dimension_semantics<parallel>], iteration_bounds = array<i64: 1>, scalar_prefetch = 0 : i64, scratch_operands = 0 : i64, tpu.core_type = #tpu.core_type<tc>, window_params = [{pipeline_mode = #tpu.pipeline_mode<synchronous>, transform_indices = @transform_0, window_bounds = array<i64: 8, 64>}, {transform_indices = @transform_1, window_bounds = array<i64: 64, 128>}, {pipeline_mode = #tpu.pipeline_mode<synchronous>, transform_indices = @transform_2, window_bounds = array<i64: 8, 1>}, {transform_indices = @transform_3, window_bounds = array<i64: 8, 128>}]} {
    %c0 = arith.constant 0 : index
    %c0_0 = arith.constant 0 : index
    %0 = vector.load %arg1[%c0, %c0_0] : memref<8x64xf32, #tpu.memory_space<vmem>>, vector<8x64xf32>
    %c0_1 = arith.constant 0 : index
    %c0_2 = arith.constant 0 : index
    %1 = vector.load %arg2[%c0_1, %c0_2] : memref<64x128xf32, #tpu.memory_space<vmem>>, vector<64x128xf32>
    %cst = arith.constant dense<0.000000e+00> : vector<8x128xf32>
    %2 = tpu.matmul %0, %1, %cst {dimension_numbers = #tpu.dot_dimension_numbers<[1], [0], [0], [1], [0, 0, 1, 1], [], []>, precision = #tpu.contract_precision<fp32>} : vector<8x64xf32>, vector<64x128xf32>, vector<8x128xf32> -> vector<8x128xf32>
    %c0_3 = arith.constant 0 : index
    %c0_4 = arith.constant 0 : index
    %3 = vector.load %arg3[%c0_3, %c0_4] : memref<8x1xf32, #tpu.memory_space<vmem>>, vector<8x1xf32>
    %4 = vector.broadcast %3 : vector<8x1xf32> to vector<8x128xf32>
    %5 = arith.addf %2, %4 : vector<8x128xf32>
    %c0_5 = arith.constant 0 : index
    %c0_6 = arith.constant 0 : index
    %6 = vector.load %arg4[%c0_5, %c0_6] : memref<8x128xf32, #tpu.memory_space<vmem>>, vector<8x128xf32>
    tpu.vector_store %arg4[%c0_5, %c0_6], %5 {strides = array<i32>} : memref<8x128xf32, #tpu.memory_space<vmem>>, vector<8x128xf32>,
    return
  }
  func.func @transform_0(%arg0: i32) -> (i32, i32) {
    %c0_i32 = arith.constant 0 : i32
    %c0_i32_0 = arith.constant 0 : i32
    %c0_i32_1 = arith.constant 0 : i32
    return %c0_i32, %c0_i32_0 : i32, i32
  }
  func.func @transform_1(%arg0: i32) -> (i32, i32) {
    %c0_i32 = arith.constant 0 : i32
    %c0_i32_0 = arith.constant 0 : i32
    return %c0_i32, %arg0 : i32, i32
  }
  func.func @transform_2(%arg0: i32) -> (i32, i32) {
    %c0_i32 = arith.constant 0 : i32
    %c0_i32_0 = arith.constant 0 : i32
    %c0_i32_1 = arith.constant 0 : i32
    return %c0_i32, %c0_i32_0 : i32, i32
  }
  func.func @transform_3(%arg0: i32) -> (i32, i32) {
    %c0_i32 = arith.constant 0 : i32
    %c0_i32_0 = arith.constant 0 : i32
    return %c0_i32, %arg0 : i32, i32
  }
}

</mosaic_0001>

<bundles_post_ra>
// kernel: conv2d_pallas.1
= control target key start
LH: loop header
LB: loop body
LE: loop exit
PB: predicated region body
PF: predicated region fallthrough
CT: control target
= control target key end

     0   :  { %vm29_vm0 = vcmask 523264   ;;  %v277_v56 = vmov 0   ;;  %s430_s1 = inlined_call_operand.vmem [shape: f32[64,128], index: 1, kind: input, shape index: {}]   ;;  %s431_s0 = inlined_call_operand.vmem [shape: f32[8,64], index: 0, kind: input, shape index: {}]   ;;  %s432_s2 = inlined_call_operand.vmem [shape: f32[8,1], index: 2, kind: input, shape index: {}]   ;;  %s433_s3 = inlined_call_operand.vmem [shape: f32[8,128], index: 3, kind: output, shape index: {}]  }
   0x1   :  { %v22_v0 = vld [vmem:[%s430_s1 + $0x38] sm:$0xff]  ;;  %v21_v1 = vld [vmem:[%s430_s1 + $0x30] sm:$0xff]  ;;  %v20_v2 = vld [vmem:[%s430_s1 + $0x28] sm:$0xff]  ;;  %276 = vset.pattern.permute.xlu0 %v277_v56 }
   0x2   :  { %v307_v3 = vand.u32 4294901760, %v22_v0  ;;  %v309_v4 = vand.u32 4294901760, %v21_v1  ;;  %v311_v5 = vand.u32 4294901760, %v20_v2  ;;  %v19_v6 = vld [vmem:[%s430_s1 + $0x20] sm:$0xff]  ;;  %v18_v7 = vld [vmem:[%s430_s1 + $0x18] sm:$0xff]  ;;  %v17_v8 = vld [vmem:[%s430_s1 + $0x10] sm:$0xff] }
   0x3   :  { %v322_v9 = vand.u32 4294901760, %v19_v6  ;;  %v324_v10 = vand.u32 4294901760, %v18_v7  ;;  %v326_v11 = vand.u32 4294901760, %v17_v8  ;;  %v16_v12 = vld [vmem:[%s430_s1 + $0x8] sm:$0xff]  ;;  %v15_v13 = vld [vmem:[%s430_s1] sm:$0xff] }
   0x4   :  { %42 = vmatpush.msra.mxu0 %v307_v3  ;;  %v336_v14 = vsub.f32 %v22_v0, %v307_v3  ;;  %v339_v15 = vsub.f32 %v21_v1, %v309_v4  ;;  %v342_v16 = vsub.f32 %v20_v2, %v311_v5  ;;  %174 = vmatpush.msra.mxu3 %v307_v3  ;;  %v345_v17 = vand.u32 4294901760, %v16_v12  ;;  %v14_v32 = vld [vmem:[%s431_s0] sm:$0xff] }
   0x5   :  { %v348_v18 = vsub.f32 %v19_v6, %v322_v9  ;;  %v351_v19 = vsub.f32 %v18_v7, %v324_v10  ;;  %v354_v20 = vsub.f32 %v17_v8, %v326_v11  ;;  %v361_v24 = vand.u32 4294901760, %v15_v13  ;;  %v23_v55 = vld [vmem:[%s432_s2] sm:$0xff] }
   0x6   :  { %44 = vmatpush.msra.mxu0 %v309_v4  ;;  %v76_v21 = vand.u32 4294901760, %v336_v14  ;;  %v82_v22 = vand.u32 4294901760, %v339_v15  ;;  %137 = vmatpush.msra.mxu2 %v336_v14  ;;  %v88_v23 = vand.u32 4294901760, %v342_v16  ;;  %v366_v26 = vsub.f32 %v16_v12, %v345_v17 }
   0x7   :  { %v94_v25 = vand.u32 4294901760, %v348_v18  ;;  %176 = vmatpush.msra.mxu3 %v309_v4  ;;  %v100_v30 = vand.u32 4294901760, %v351_v19  ;;  %v106_v31 = vand.u32 4294901760, %v354_v20  ;;  %v117_v36 = vsub.f32 %v15_v13, %v361_v24  ;;  %26 = vperm.xlu0 %276, %v23_v55  }
   0x8   :  { %v77_v27 = vsub.f32 %v336_v14, %v76_v21  ;;  %46 = vmatpush.msra.mxu0 %v311_v5  ;;  %v83_v28 = vsub.f32 %v339_v15, %v82_v22  ;;  %v89_v29 = vsub.f32 %v342_v16, %v88_v23  ;;  %140 = vmatpush.msra.mxu2 %v339_v15  ;;  %v112_v39 = vand.u32 4294901760, %v366_v26 }
   0x9   :  { %178 = vmatpush.msra.mxu3 %v311_v5  ;;  %v95_v35 = vsub.f32 %v348_v18, %v94_v25  ;;  %v101_v38 = vsub.f32 %v351_v19, %v100_v30  ;;  %v31_v40 = vsel %vm29_vm0, %v14_v32, 0  ;;  %v107_v43 = vsub.f32 %v354_v20, %v106_v31 }
   0xa   :  { %v78_v33 = vand.u32 4294901760, %v77_v27  ;;  %v84_v34 = vand.u32 4294901760, %v83_v28  ;;  %48 = vmatpush.msra.mxu0 %v322_v9  ;;  %143 = vmatpush.msra.mxu2 %v342_v16  ;;  %v90_v37 = vand.u32 4294901760, %v89_v29  ;;  %v57_v41 = vand.u32 4294901760, %v31_v40 }
   0xb   :  { %180 = vmatpush.msra.mxu3 %v322_v9  ;;  %v96_v42 = vand.u32 4294901760, %v95_v35  ;;  %v118_v44 = vand.u32 4294901760, %v117_v36  ;;  %v102_v46 = vand.u32 4294901760, %v101_v38  ;;  %v113_v47 = vsub.f32 %v366_v26, %v112_v39 }
   0xc   :  { %79 = vmatpush.msra.mxu1 %v78_v33  ;;  %50 = vmatpush.msra.mxu0 %v324_v10  ;;  %v58_v45 = vsub.f32 %v31_v40, %v57_v41  ;;  %v108_v49 = vand.u32 4294901760, %v107_v43 }
   0xd   :  { %146 = vmatpush.msra.mxu2 %v348_v18  ;;  %182 = vmatpush.msra.mxu3 %v324_v10  ;;  %v119_v50 = vsub.f32 %v117_v36, %v118_v44  ;;  %v114_v52 = vand.u32 4294901760, %v113_v47 }
   0xe   :  { %85 = vmatpush.msra.mxu1 %v84_v34  ;;  %52 = vmatpush.msra.mxu0 %v326_v11  ;;  %v59_v48 = vand.u32 4294901760, %v58_v45 }
   0xf   :  { %149 = vmatpush.msra.mxu2 %v351_v19  ;;  %184 = vmatpush.msra.mxu3 %v326_v11  ;;  %v120_v54 = vand.u32 4294901760, %v119_v50 }
  0x10   :  { %91 = vmatpush.msra.mxu1 %v90_v37  ;;  %54 = vmatpush.msra.mxu0 %v345_v17  ;;  %v60_v51 = vsub.f32 %v58_v45, %v59_v48 }
  0x11   :  { %152 = vmatpush.msra.mxu2 %v354_v20  ;;  %186 = vmatpush.msra.mxu3 %v345_v17 }
  0x12   :  { %97 = vmatpush.msra.mxu1 %v96_v42  ;;  %56 = vmatpush.msra.mxu0 %v361_v24  ;;  %v61_v53 = vand.u32 4294901760, %v60_v51 }
  0x13   :  { %155 = vmatpush.msra.mxu2 %v366_v26  ;;  %188 = vmatpush.msra.mxu3 %v361_v24 }
  0x14   :  { %207 = vmatpush.msrb.mxu0 %v76_v21  ;;  %103 = vmatpush.msra.mxu1 %v102_v46 }
  0x15   :  { %158 = vmatpush.msra.mxu2 %v117_v36  ;;  %192 = vmatmul.f32.vlgmr.msra.gmra.mxu3 %v59_v48 }
  0x16   :  { %211 = vmatpush.msrb.mxu0 %v82_v22  ;;  %109 = vmatpush.msra.mxu1 %v108_v49 }
  0x17   :  { %161 = vmatmul.f32.vlgmr.msra.gmra.mxu2 %v58_v45  ;;  %62 = vmatmul.f32.vlgmr.msra.gmra.mxu0 %v61_v53 }
  0x18   :  { %215 = vmatpush.msrb.mxu0 %v88_v23  ;;  %115 = vmatpush.msra.mxu1 %v114_v52 }
  0x1a   :  { %219 = vmatpush.msrb.mxu0 %v94_v25  ;;  %121 = vmatpush.msra.mxu1 %v120_v54 }
  0x1b   :  { %123 = vmatmul.f32.vlgmr.msra.gmra.mxu1 %v57_v41 }
  0x1c   :  { %250 = vmatpush.msrb.mxu1 %v307_v3  ;;  %223 = vmatpush.msrb.mxu0 %v100_v30 }
  0x1e   :  { %252 = vmatpush.msrb.mxu1 %v309_v4  ;;  %227 = vmatpush.msrb.mxu0 %v106_v31 }
  0x20   :  { %254 = vmatpush.msrb.mxu1 %v311_v5  ;;  %231 = vmatpush.msrb.mxu0 %v112_v39 }
  0x22   :  { %256 = vmatpush.msrb.mxu1 %v322_v9  ;;  %235 = vmatpush.msrb.mxu0 %v118_v44 }
  0x23   :  { %237 = vmatmul.f32.vlgmr.msrb.gmra.mxu0 %v57_v41 }
  0x24   :  { %258 = vmatpush.msrb.mxu1 %v324_v10 }
  0x26   :  { %260 = vmatpush.msrb.mxu1 %v326_v11 }
  0x28   :  { %262 = vmatpush.msrb.mxu1 %v345_v17 }
  0x2a   :  { %264 = vmatpush.msrb.mxu1 %v361_v24 }
  0x2b   :  { %266 = vmatmul.f32.vlgmr.msrb.gmra.mxu1 %v57_v41 }
  0x79   :  { %v27_v57 = vpop.permute.xlu0 %26 }
  0x94   :  { %v63_v58 = vpop.f32.mrf.mxu0 }
  0x95   :  { %v64_v59 = vadd.f32 %v63_v58, %v27_v57 }
  0x98   :  { %v124_v60 = vpop.f32.mrf.mxu1  ;;  %v193_v0 = vpop.f32.mrf.mxu3 }
  0x99   :  { %v125_v62 = vadd.f32 %v124_v60, %v64_v59 }
  0x9a   :  { %v162_v61 = vpop.f32.mrf.mxu2 }
  0x9b   :  { %v163_v63 = vadd.f32 %v162_v61, %v125_v62 }
  0x9d   :  { %v194_v1 = vadd.f32 %v193_v0, %v163_v63 }
  0xa0   :  { %v238_v2 = vpop.f32.mrf.mxu0 }
  0xa1   :  { %v239_v3 = vadd.f32 %v238_v2, %v194_v1 }
  0xa8   :  { %v267_v4 = vpop.f32.mrf.mxu1 }
  0xa9   :  { %v268_v5 = vadd.f32 %v267_v4, %v239_v3 }
  0xab   :  { %270 = vst [vmem:[%s433_s3] sm:$0xff] %v268_v5 }

</bundles_post_ra>
